<compile_context>
chip_gen: v7x
topology: tpu7x:2x2x1
jax: 0.10.0
libtpu: 0.0.40
codegen_flags: <defaults>
</compile_context>

<pallas_src>
import jax
import jax.numpy as jnp
from jax.experimental import pallas as pl
from jax.experimental.pallas import tpu as pltpu

# ---------------- model hyper-parameters (small, consistent with module) ----
B = 2           # batch
L = 16          # sequence length
C_IN = 4        # input_dim
D_MODEL = 32    # d_model
K = 3           # conv kernel size (padding=1)
R = B * L       # folded rows
C_PAD = D_MODEL # layer-1 input channels zero-padded to this width

# Set to jax.lax.Precision.HIGH / DEFAULT (and loosen the tolerance) if the
# downstream consumer tolerates bf16-pass matmul error.
MATMUL_PRECISION = jax.lax.Precision.HIGHEST


def conv_embed_kernel(x_ref, w_ref, b_ref, out_ref):
    # Whole (folded-batch) problem lives in VMEM; single invocation, no grid.
    h = x_ref[...]                                             # (R, C_PAD) f32

    # Batch-boundary masks: the circular roll wraps across the folded batch
    # axis; these zero exactly the wrapped / cross-batch rows.
    row = jax.lax.broadcasted_iota(jnp.int32, (R, 1), 0)
    pos = row % L
    not_first = (pos != 0).astype(jnp.float32)                 # (R, 1)
    not_last = (pos != (L - 1)).astype(jnp.float32)            # (R, 1)

    for l in range(3):                                         # unrolled: 3 conv+ReLU layers
        h_prev = pltpu.roll(h, shift=1, axis=0) * not_first    # h[t-1]
        h_next = pltpu.roll(h, shift=R - 1, axis=0) * not_last # h[t+1]
        # taps lane-concatenated: 3*32 = 96 lanes, still one vreg wide
        h_cat = jnp.concatenate([h_prev, h, h_next], axis=1)   # (R, 3*C_PAD)
        y = jnp.dot(h_cat, w_ref[l],
                    preferred_element_type=jnp.float32,
                    precision=MATMUL_PRECISION) + b_ref[l:l + 1, :]
        h = jnp.maximum(y, 0.0)

    out_ref[...] = h.astype(out_ref.dtype)
    # TODO(synk): if d_model ever grows past 128, revisit a lane-dense padded
    # output for v5e's single vector-store slot.


def pack_conv_weight(cw):
    """PyTorch Conv1d weight (C_out, C_in, K) -> (K*C_PAD, C_out), tap-major rows."""
    c_out, c_in, k = cw.shape
    w = jnp.transpose(cw, (2, 1, 0))                           # (K, C_in, C_out)
    if c_in < C_PAD:
        w = jnp.pad(w, ((0, 0), (0, C_PAD - c_in), (0, 0)))
    return w.reshape(k * C_PAD, c_out)                         # rows [k*32:(k+1)*32] = tap k


@jax.jit
def conv_embedding_1d(x, w_all, b_all):
    """x: (B, L, C_IN); w_all: (3, K*C_PAD, D_MODEL); b_all: (3, D_MODEL)."""
    xf = x.reshape(R, C_IN)                                    # fold batch into rows
    x_pad = jnp.pad(xf, ((0, 0), (0, C_PAD - C_IN)))           # pad channels 4 -> 32

    vmem = lambda: pl.BlockSpec(memory_space=pltpu.MemorySpace.VMEM)
    out = pl.pallas_call(
        conv_embed_kernel,
        out_shape=jax.ShapeDtypeStruct((R, D_MODEL), jnp.float32),
        in_specs=[vmem(), vmem(), vmem()],
        out_specs=vmem(),
    )(x_pad, w_all, b_all)
    return out.reshape(B, L, D_MODEL)


# ---------------- pure-JAX reference (mirrors the PyTorch module) -----------
def ref_forward(x, cw1, cb1, cw2, cb2, cw3, cb3):
    # x: (B, L, C_IN); cw*: PyTorch Conv1d layout (C_out, C_in, K); cb*: (C_out,)
    h = jnp.transpose(x, (0, 2, 1))                            # (B, C_in, L)

    def conv(h, w, b):
        y = jax.lax.conv_general_dilated(
            h, w, window_strides=(1,), padding=((1, 1),),
            dimension_numbers=("NCH", "OIH", "NCH"),
            precision=jax.lax.Precision.HIGHEST)
        return jnp.maximum(y + b[None, :, None], 0.0)

    h = conv(h, cw1, cb1)
    h = conv(h, cw2, cb2)
    h = conv(h, cw3, cb3)
    return jnp.transpose(h, (0, 2, 1))                         # (B, L, D_MODEL)


if __name__ == "__main__":
    key = jax.random.PRNGKey(0)
    ks = jax.random.split(key, 8)

    def rnd(k, shape, scale):
        return (scale * jax.random.normal(k, shape)).astype(jnp.float32)

    # PyTorch-layout conv weights/biases: (C_out, C_in, K), (C_out,)
    cw1 = rnd(ks[0], (D_MODEL, C_IN, K), 0.30)
    cb1 = rnd(ks[1], (D_MODEL,), 0.10)
    cw2 = rnd(ks[2], (D_MODEL, D_MODEL, K), 0.15)
    cb2 = rnd(ks[3], (D_MODEL,), 0.10)
    cw3 = rnd(ks[4], (D_MODEL, D_MODEL, K), 0.15)
    cb3 = rnd(ks[5], (D_MODEL,), 0.10)

    # Kernel-friendly packing: one (3, 96, 32) weight array, one (3, 32) bias array.
    w_all = jnp.stack([pack_conv_weight(cw1),
                       pack_conv_weight(cw2),
                       pack_conv_weight(cw3)], axis=0)
    b_all = jnp.stack([cb1, cb2, cb3], axis=0)

    x = jax.random.normal(ks[6], (B, L, C_IN), dtype=jnp.float32)

    out = conv_embedding_1d(x, w_all, b_all)
    out = jax.block_until_ready(out)

    ref = ref_forward(x, cw1, cb1, cw2, cb2, cw3, cb3)
    assert out.shape == (B, L, D_MODEL)
    max_err = float(jnp.max(jnp.abs(out - ref)))
    assert jnp.allclose(out, ref, atol=1e-4, rtol=1e-4), max_err

    print("KERNEL_OK")
</pallas_src>

<mosaic_0001>
module attributes {stable_mosaic.version = 11 : i64} {
  func.func @conv_embed_kernel(%arg0: memref<32x32xf32, #tpu.memory_space<vmem>>, %arg1: memref<3x96x32xf32, #tpu.memory_space<vmem>>, %arg2: memref<3x32xf32, #tpu.memory_space<vmem>>, %arg3: memref<32x32xf32, #tpu.memory_space<vmem>>) attributes {dimension_semantics = [], scalar_prefetch = 0 : i64, scratch_operands = 0 : i64, tpu.core_type = #tpu.core_type<tc>} {
    %c0 = arith.constant 0 : index
    %c0_0 = arith.constant 0 : index
    %0 = vector.load %arg0[%c0, %c0_0] : memref<32x32xf32, #tpu.memory_space<vmem>>, vector<32x32xf32>
    %1 = tpu.iota {dimensions = array<i32: 0>} : vector<32x1xi32>
    %c16_i32 = arith.constant 16 : i32
    %c0_i32 = arith.constant 0 : i32
    %2 = arith.cmpi eq, %c16_i32, %c0_i32 : i32
    %c1_i32 = arith.constant 1 : i32
    %3 = arith.select %2, %c1_i32, %c16_i32 : i32
    %4 = vector.broadcast %3 : i32 to vector<32x1xi32>
    %5 = arith.remsi %1, %4 : vector<32x1xi32>
    %c0_i32_1 = arith.constant 0 : i32
    %6 = vector.broadcast %c0_i32_1 : i32 to vector<32x1xi32>
    %7 = arith.cmpi ne, %5, %6 : vector<32x1xi32>
    %c0_i32_2 = arith.constant 0 : i32
    %8 = vector.broadcast %c0_i32_2 : i32 to vector<32x1xi32>
    %9 = arith.cmpi slt, %5, %8 : vector<32x1xi32>
    %c0_i32_3 = arith.constant 0 : i32
    %10 = arith.cmpi slt, %3, %c0_i32_3 : i32
    %11 = vector.broadcast %10 : i1 to vector<32x1xi1>
    %12 = vector.broadcast %11 : vector<32x1xi1> to vector<32x1xi1>
    %13 = arith.xori %9, %12 : vector<32x1xi1>
    %14 = arith.andi %13, %7 : vector<32x1xi1>
    %15 = vector.broadcast %3 : i32 to vector<32x1xi32>
    %16 = arith.addi %5, %15 : vector<32x1xi32>
    %17 = arith.select %14, %16, %5 : vector<32x1xi1>, vector<32x1xi32>
    %c0_i32_4 = arith.constant 0 : i32
    %18 = vector.broadcast %c0_i32_4 : i32 to vector<32x1xi32>
    %19 = arith.cmpi ne, %17, %18 : vector<32x1xi32>
    %20 = arith.extui %19 : vector<32x1xi1> to vector<32x1xi32>
    %21 = arith.sitofp %20 : vector<32x1xi32> to vector<32x1xf32>
    %c15_i32 = arith.constant 15 : i32
    %22 = vector.broadcast %c15_i32 : i32 to vector<32x1xi32>
    %23 = arith.cmpi ne, %17, %22 : vector<32x1xi32>
    %24 = arith.extui %23 : vector<32x1xi1> to vector<32x1xi32>
    %25 = arith.sitofp %24 : vector<32x1xi32> to vector<32x1xf32>
    %c1_i32_5 = arith.constant 1 : i32
    %26 = tpu.dynamic_rotate %0 by %c1_i32_5 dim 0 : vector<32x32xf32>, i32 -> vector<32x32xf32>
    %27 = vector.broadcast %21 : vector<32x1xf32> to vector<32x32xf32>
    %28 = arith.mulf %26, %27 : vector<32x32xf32>
    %c31_i32 = arith.constant 31 : i32
    %29 = tpu.dynamic_rotate %0 by %c31_i32 dim 0 : vector<32x32xf32>, i32 -> vector<32x32xf32>
    %30 = vector.broadcast %25 : vector<32x1xf32> to vector<32x32xf32>
    %31 = arith.mulf %29, %30 : vector<32x32xf32>
    %32 = tpu.concatenate %28, %0, %31 in 1 : vector<32x32xf32>, vector<32x32xf32>, vector<32x32xf32> -> vector<32x96xf32>
    %c0_6 = arith.constant 0 : index
    %c0_7 = arith.constant 0 : index
    %c0_8 = arith.constant 0 : index
    %33 = vector.load %arg1[%c0_6, %c0_7, %c0_8] : memref<3x96x32xf32, #tpu.memory_space<vmem>>, vector<1x96x32xf32>
    %34 = vector.shape_cast %33 : vector<1x96x32xf32> to vector<96x32xf32>
    %cst = arith.constant dense<0.000000e+00> : vector<32x32xf32>
    %35 = tpu.matmul %32, %34, %cst {dimension_numbers = #tpu.dot_dimension_numbers<[1], [0], [0], [1], [0, 0, 1, 1], [], []>, precision = #tpu.contract_precision<fp32>} : vector<32x96xf32>, vector<96x32xf32>, vector<32x32xf32> -> vector<32x32xf32>
    %c0_9 = arith.constant 0 : index
    %c0_10 = arith.constant 0 : index
    %36 = vector.load %arg2[%c0_9, %c0_10] : memref<3x32xf32, #tpu.memory_space<vmem>>, vector<1x32xf32>
    %37 = vector.broadcast %36 : vector<1x32xf32> to vector<32x32xf32>
    %38 = arith.addf %35, %37 : vector<32x32xf32>
    %cst_11 = arith.constant 0.000000e+00 : f32
    %39 = vector.broadcast %cst_11 : f32 to vector<32x32xf32>
    %40 = arith.maximumf %38, %39 : vector<32x32xf32>
    %c1_i32_12 = arith.constant 1 : i32
    %41 = tpu.dynamic_rotate %40 by %c1_i32_12 dim 0 : vector<32x32xf32>, i32 -> vector<32x32xf32>
    %42 = vector.broadcast %21 : vector<32x1xf32> to vector<32x32xf32>
    %43 = arith.mulf %41, %42 : vector<32x32xf32>
    %c31_i32_13 = arith.constant 31 : i32
    %44 = tpu.dynamic_rotate %40 by %c31_i32_13 dim 0 : vector<32x32xf32>, i32 -> vector<32x32xf32>
    %45 = vector.broadcast %25 : vector<32x1xf32> to vector<32x32xf32>
    %46 = arith.mulf %44, %45 : vector<32x32xf32>
    %47 = tpu.concatenate %43, %40, %46 in 1 : vector<32x32xf32>, vector<32x32xf32>, vector<32x32xf32> -> vector<32x96xf32>
    %c1 = arith.constant 1 : index
    %c0_14 = arith.constant 0 : index
    %c0_15 = arith.constant 0 : index
    %48 = vector.load %arg1[%c1, %c0_14, %c0_15] : memref<3x96x32xf32, #tpu.memory_space<vmem>>, vector<1x96x32xf32>
    %49 = vector.shape_cast %48 : vector<1x96x32xf32> to vector<96x32xf32>
    %cst_16 = arith.constant dense<0.000000e+00> : vector<32x32xf32>
    %50 = tpu.matmul %47, %49, %cst_16 {dimension_numbers = #tpu.dot_dimension_numbers<[1], [0], [0], [1], [0, 0, 1, 1], [], []>, precision = #tpu.contract_precision<fp32>} : vector<32x96xf32>, vector<96x32xf32>, vector<32x32xf32> -> vector<32x32xf32>
    %c1_17 = arith.constant 1 : index
    %c0_18 = arith.constant 0 : index
    %51 = vector.load %arg2[%c1_17, %c0_18] : memref<3x32xf32, #tpu.memory_space<vmem>>, vector<1x32xf32>
    %52 = vector.broadcast %51 : vector<1x32xf32> to vector<32x32xf32>
    %53 = arith.addf %50, %52 : vector<32x32xf32>
    %cst_19 = arith.constant 0.000000e+00 : f32
    %54 = vector.broadcast %cst_19 : f32 to vector<32x32xf32>
    %55 = arith.maximumf %53, %54 : vector<32x32xf32>
    %c1_i32_20 = arith.constant 1 : i32
    %56 = tpu.dynamic_rotate %55 by %c1_i32_20 dim 0 : vector<32x32xf32>, i32 -> vector<32x32xf32>
    %57 = vector.broadcast %21 : vector<32x1xf32> to vector<32x32xf32>
    %58 = arith.mulf %56, %57 : vector<32x32xf32>
    %c31_i32_21 = arith.constant 31 : i32
    %59 = tpu.dynamic_rotate %55 by %c31_i32_21 dim 0 : vector<32x32xf32>, i32 -> vector<32x32xf32>
    %60 = vector.broadcast %25 : vector<32x1xf32> to vector<32x32xf32>
    %61 = arith.mulf %59, %60 : vector<32x32xf32>
    %62 = tpu.concatenate %58, %55, %61 in 1 : vector<32x32xf32>, vector<32x32xf32>, vector<32x32xf32> -> vector<32x96xf32>
    %c2 = arith.constant 2 : index
    %c0_22 = arith.constant 0 : index
    %c0_23 = arith.constant 0 : index
    %63 = vector.load %arg1[%c2, %c0_22, %c0_23] : memref<3x96x32xf32, #tpu.memory_space<vmem>>, vector<1x96x32xf32>
    %64 = vector.shape_cast %63 : vector<1x96x32xf32> to vector<96x32xf32>
    %cst_24 = arith.constant dense<0.000000e+00> : vector<32x32xf32>
    %65 = tpu.matmul %62, %64, %cst_24 {dimension_numbers = #tpu.dot_dimension_numbers<[1], [0], [0], [1], [0, 0, 1, 1], [], []>, precision = #tpu.contract_precision<fp32>} : vector<32x96xf32>, vector<96x32xf32>, vector<32x32xf32> -> vector<32x32xf32>
    %c2_25 = arith.constant 2 : index
    %c0_26 = arith.constant 0 : index
    %66 = vector.load %arg2[%c2_25, %c0_26] : memref<3x32xf32, #tpu.memory_space<vmem>>, vector<1x32xf32>
    %67 = vector.broadcast %66 : vector<1x32xf32> to vector<32x32xf32>
    %68 = arith.addf %65, %67 : vector<32x32xf32>
    %cst_27 = arith.constant 0.000000e+00 : f32
    %69 = vector.broadcast %cst_27 : f32 to vector<32x32xf32>
    %70 = arith.maximumf %68, %69 : vector<32x32xf32>
    %c0_28 = arith.constant 0 : index
    %c0_29 = arith.constant 0 : index
    %71 = vector.load %arg3[%c0_28, %c0_29] : memref<32x32xf32, #tpu.memory_space<vmem>>, vector<32x32xf32>
    tpu.vector_store %arg3[%c0_28, %c0_29], %70 {strides = array<i32>} : memref<32x32xf32, #tpu.memory_space<vmem>>, vector<32x32xf32>,
    return
  }
}

</mosaic_0001>

<bundles_post_ra>
// kernel: conv_embedding_1d.1
= control target key start
LH: loop header
LB: loop body
LE: loop exit
PB: predicated region body
PF: predicated region fallthrough
CT: control target
= control target key end

     0   :  { %v19_v2 = vlaneseq  ;;  %s3961_s18 = smov 32   ;;  %s3962_s5 = smov 64   ;;  %s5250_s0 = inlined_call_operand.vmem [shape: f32[32,32], index: 0, kind: input, shape index: {}]   ;;  %s5251_s1 = inlined_call_operand.vmem [shape: f32[3,96,32], index: 1, kind: input, shape index: {}]   ;;  %s5252_s2 = inlined_call_operand.vmem [shape: f32[3,32], index: 2, kind: input, shape index: {}]   ;;  %s5253_s3 = inlined_call_operand.hbm [shape: f32[32,32], index: 3, kind: output, shape index: {}]  }
   0x1   :  { %v3990_v0 = vld [vmem:[%s5250_s0] sm:$0xff]  ;;  %v3995_v1 = vld [vmem:[%s5250_s0 + $0x8] sm:$0xff]  ;;  %v4000_v3 = vld [vmem:[%s5250_s0 + $0x10] sm:$0xff] }
   0x2   :  { %126 = vrot.lane.b32.xlu0 %v3990_v0, %s3961_s18  ;;  %v109_v4 = vrot.slane %v3990_v0, 1  ;;  %v110_v5 = vrot.slane %v3995_v1, 1  ;;  %v111_v6 = vrot.slane %v4000_v3, 1  ;;  %v4010_v7 = vld [vmem:[%s5251_s1] sm:$0xff]  ;;  %v4012_v8 = vshrl.u32 %v19_v2, 7  ;;  %v4017_v9 = vld [vmem:[%s5250_s0 + $0x18] sm:$0xff] }
   0x3   :  { %v4022_v10 = vld [vmem:[%s5251_s1 + $0x8] sm:$0xff]  ;;  %v195_v11 = vand.u32 4294901760, %v4010_v7  ;;  %v4028_v12 = vld [vmem:[%s5251_s1 + $0x10] sm:$0xff]  ;;  %v96_v13 = vrot.slane %v3990_v0, 7  ;;  %v99_v14 = vrot.slane %v4017_v9, 7  ;;  %v4036_v16 = vld [vmem:[%s5251_s1 + $0x18] sm:$0xff] }
   0x4   :  { %v198_v15 = vand.u32 4294901760, %v4022_v10  ;;  %v201_v17 = vand.u32 4294901760, %v4028_v12  ;;  %vm113_vm0 = vcmp.lt.s32.totalorder %v4012_v8, 7  ;;  %v21_v18 = vadd.s32 8, %v4012_v8  ;;  %v4046_v21 = vld [vmem:[%s5251_s1 + $0x20] sm:$0xff]  ;;  %v4051_v22 = vld [vmem:[%s5251_s1 + $0x28] sm:$0xff] }
   0x5   :  { %v23_v19 = vadd.s32 24, %v4012_v8  ;;  %v204_v20 = vand.u32 4294901760, %v4036_v16  ;;  %v116_v23 = vsel %vm113_vm0, %v109_v4, %v110_v5  ;;  %v115_v24 = vsel %vm113_vm0, %v110_v5, %v111_v6 }
   0x6   :  { %128 = vrot.lane.b32.xlu0 %v3995_v1, %s3961_s18  ;;  %v112_v25 = vrot.slane %v4017_v9, 1  ;;  %142 = vrot.lane.b32.xlu1 %v116_v23, %s3962_s5  ;;  %v35_v26 = vand.u32 15, %v21_v18  ;;  %v4065_v28 = vpack.c.bf16 %v198_v15, %v195_v11 }
   0x7   :  { %v49_v27 = vand.u32 15, %v23_v19  ;;  %v4071_v29 = vpack.c.bf16 %v204_v20, %v201_v17 }
   0x8   :  { %8 = vsyncpa [#allocation3], 0  ;;  %v207_v30 = vand.u32 4294901760, %v4046_v21  ;;  %v210_v31 = vand.u32 4294901760, %v4051_v22  ;;  %v28_v32 = vand.u32 15, %v4012_v8  ;;  %vm100_vm1 = vcmp.lt.s32.totalorder %v4012_v8, 1  ;;  %3500 = vmatprep.subr.bf16.mxu0 %v4065_v28  ;;  %3428 = vmatprep.subr.bf16.mxu1 %v4065_v28 }
   0x9   :  { %vm85_vm2 = vcmp.ne.s32.totalorder %v35_v26, 15  ;;  %vm4077_vm3 = vcmp.ne.s32.totalorder %v49_v27, 15  ;;  %v4089_v34 = vsel %vm100_vm1, %v99_v14, %v96_v13  ;;  %v4094_v35 = vld [vmem:[%s5251_s1 + $0x30] sm:$0xff]  ;;  %v4099_v36 = vld [vmem:[%s5251_s1 + $0x38] sm:$0xff]  ;;  %v3963_v37 = vmov 0.0   ;;  %3502 = vmatpush3.bf16.msra.mxu0 %v4065_v28  ;;  %v4113_v41 = vld [vmem:[%s5251_s1 + $0x40] sm:$0xff]  ;;  %3430 = vmatpush3.bf16.msra.mxu1 %v4065_v28 }
   0xa   :  { %v4101_v38 = vsel %vm85_vm2, 1.0, %v3963_v37  ;;  %130 = vrot.lane.b32.xlu0 %v4000_v3, %s3961_s18  ;;  %v114_v39 = vsel %vm113_vm0, %v111_v6, %v112_v25  ;;  %v117_v40 = vsel %vm113_vm0, %v112_v25, %v109_v4  ;;  %vm72_vm4 = vcmp.ne.s32.totalorder %v28_v32, 0  ;;  %v4118_v42 = vld [vmem:[%s5251_s1 + $0x48] sm:$0xff]  ;;  %3504 = vmatprep.subr.bf16.mxu0 %v4071_v29  ;;  %v4134_v47 = vld [vmem:[%s5251_s1 + $0x50] sm:$0xff]  ;;  %v4143_v51 = vld [vmem:[%s5251_s1 + $0x58] sm:$0xff] }
   0xb   :  { %v119_v43 = vmul.f32 %v4101_v38, %v115_v24  ;;  %v4123_v44 = vsel %vm4077_vm3, 1.0, %v3963_v37  ;;  %v4127_v45 = vpack.c.bf16 %v210_v31, %v207_v30  ;;  %v4129_v46 = vsel %vm72_vm4, 1.0, %v3963_v37  ;;  %3432 = vmatprep.subr.bf16.mxu1 %v4071_v29 }
   0xc   :  { %v213_v48 = vand.u32 4294901760, %v4094_v35  ;;  %v216_v49 = vand.u32 4294901760, %v4099_v36  ;;  %v97_v50 = vrot.slane %v3995_v1, 7  ;;  %v219_v52 = vand.u32 4294901760, %v4113_v41 }
   0xd   :  { %144 = vrot.lane.b32.xlu1 %v119_v43, %s3962_s5  ;;  %v222_v53 = vand.u32 4294901760, %v4118_v42  ;;  %v22_v54 = vadd.s32 16, %v4012_v8  ;;  %v98_v55 = vrot.slane %v4000_v3, 7  ;;  %v121_v56 = vmul.f32 %v4123_v44, %v117_v40  ;;  %3506 = vmatpush3.bf16.msra.mxu0 %v4071_v29 }
   0xe   :  { %146 = vrot.lane.b32.xlu0 %v114_v39, %s3962_s5  ;;  %v4153_v57 = vpack.c.bf16 %v216_v49, %v213_v48  ;;  %v4159_v58 = vsel %vm100_vm1, %v96_v13, %v97_v50  ;;  %v225_v59 = vand.u32 4294901760, %v4134_v47  ;;  %3508 = vmatprep.subr.bf16.mxu0 %v4127_v45  ;;  %v228_v62 = vand.u32 4294901760, %v4143_v51 }
   0xf   :  { %3434 = vmatpush3.bf16.msra.mxu1 %v4071_v29  ;;  %v42_v60 = vand.u32 15, %v22_v54  ;;  %v4166_v61 = vsel %vm100_vm1, %v97_v50, %v98_v55  ;;  %v4173_v63 = vsel %vm100_vm1, %v98_v55, %v99_v14  ;;  %v4176_v0 = vpack.c.bf16 %v222_v53, %v219_v52 }
  0x10   :  { %3436 = vmatprep.subr.bf16.mxu1 %v4127_v45  ;;  %v4181_v1 = vsub.f32 %v4010_v7, %v195_v11  ;;  %v4186_v2 = vsub.f32 %v4022_v10, %v198_v15  ;;  %v4191_v3 = vsub.f32 %v4028_v12, %v201_v17  ;;  %v4198_v4 = vsub.f32 %v4036_v16, %v204_v20 }
  0x11   :  { %132 = vrot.lane.b32.xlu1 %v4017_v9, %s3961_s18  ;;  %vm74_vm5 = vcmp.ne.s32.totalorder %v42_v60, 0  ;;  %v4201_v5 = vsub.f32 %v4046_v21, %v207_v30  ;;  %v4204_v6 = vsub.f32 %v4051_v22, %v210_v31  ;;  %3510 = vmatpush3.bf16.msra.mxu0 %v4127_v45  ;;  %v4214_v12 = vpack.c.bf16 %v228_v62, %v225_v59 }
  0x12   :  { %v4207_v7 = vsel %vm74_vm5, 1.0, %v3963_v37  ;;  %v314_v10 = vand.u32 4294901760, %v4181_v1  ;;  %v321_v9 = vand.u32 4294901760, %v4186_v2  ;;  %v328_v11 = vand.u32 4294901760, %v4191_v3  ;;  %3512 = vmatprep.subr.bf16.mxu0 %v4153_v57 }
  0x13   :  { %3438 = vmatpush3.bf16.msra.mxu1 %v4127_v45  ;;  %v335_v13 = vand.u32 4294901760, %v4198_v4  ;;  %v342_v14 = vand.u32 4294901760, %v4201_v5  ;;  %v349_v15 = vand.u32 4294901760, %v4204_v6  ;;  %v355_v32 = vsub.f32 %v4094_v35, %v213_v48 }
  0x14   :  { %3440 = vmatprep.subr.bf16.mxu1 %v4153_v57  ;;  %v4220_v16 = vpack.c.bf16 %v321_v9, %v314_v10  ;;  %v315_v17 = vsub.f32 %v4181_v1, %v314_v10  ;;  %v322_v18 = vsub.f32 %v4186_v2, %v321_v9  ;;  %v329_v19 = vsub.f32 %v4191_v3, %v328_v11 }
  0x15   :  { %148 = vrot.lane.b32.xlu1 %v121_v56, %s3962_s5  ;;  %v4226_v20 = vpack.c.bf16 %v335_v13, %v328_v11  ;;  %v336_v21 = vsub.f32 %v4198_v4, %v335_v13  ;;  %v4229_v22 = vpack.c.bf16 %v349_v15, %v342_v14  ;;  %v343_v23 = vsub.f32 %v4201_v5, %v342_v14 }
  0x16   :  { %3514 = vmatpush3.bf16.msra.mxu0 %v4153_v57  ;;  %v316_v24 = vand.u32 4294901760, %v315_v17  ;;  %v323_v25 = vand.u32 4294901760, %v322_v18  ;;  %v330_v26 = vand.u32 4294901760, %v329_v19  ;;  %v350_v27 = vsub.f32 %v4204_v6, %v349_v15 }
  0x17   :  { %3516 = vmatprep.subr.bf16.mxu0 %v4176_v0  ;;  %3442 = vmatpush3.bf16.msra.mxu1 %v4153_v57  ;;  %v337_v30 = vand.u32 4294901760, %v336_v21  ;;  %v344_v31 = vand.u32 4294901760, %v343_v23  ;;  %v362_v33 = vsub.f32 %v4099_v36, %v216_v49  ;;  %v369_v40 = vsub.f32 %v4113_v41, %v219_v52 }
  0x18   :  { %3444 = vmatprep.subr.bf16.mxu1 %v4176_v0  ;;  %v4239_v37 = vpack.c.bf16 %v323_v25, %v316_v24  ;;  %v351_v39 = vand.u32 4294901760, %v350_v27  ;;  %v376_v43 = vsub.f32 %v4118_v42, %v222_v53  ;;  %v356_v54 = vand.u32 4294901760, %v355_v32 }
  0x19   :  { %v4243_v50 = vpack.c.bf16 %v337_v30, %v330_v26  ;;  %v363_v55 = vand.u32 4294901760, %v362_v33  ;;  %v383_v56 = vsub.f32 %v4134_v47, %v225_v59  ;;  %v370_v36 = vand.u32 4294901760, %v369_v40 }
  0x1a   :  { %3518 = vmatpush3.bf16.msra.mxu0 %v4176_v0  ;;  %v4247_v35 = vpack.c.bf16 %v351_v39, %v344_v31  ;;  %v377_v48 = vand.u32 4294901760, %v376_v43  ;;  %v390_v49 = vsub.f32 %v4143_v51, %v228_v62  ;;  %v357_v42 = vsub.f32 %v355_v32, %v356_v54 }
  0x1b   :  { %3520 = vmatprep.subr.bf16.mxu0 %v4214_v12  ;;  %3446 = vmatpush3.bf16.msra.mxu1 %v4176_v0  ;;  %v4252_v41 = vpack.c.bf16 %v363_v55, %v356_v54  ;;  %v364_v52 = vsub.f32 %v362_v33, %v363_v55  ;;  %v384_v53 = vand.u32 4294901760, %v383_v56  ;;  %v371_v59 = vsub.f32 %v369_v40, %v370_v36 }
  0x1c   :  { %3448 = vmatprep.subr.bf16.mxu1 %v4214_v12  ;;  %v4255_v47 = vpack.c.bf16 %v377_v48, %v370_v36  ;;  %v378_v60 = vsub.f32 %v376_v43, %v377_v48  ;;  %v391_v10 = vand.u32 4294901760, %v390_v49  ;;  %v358_v9 = vand.u32 4294901760, %v357_v42 }
  0x1d   :  { %v365_v11 = vand.u32 4294901760, %v364_v52  ;;  %v385_v13 = vsub.f32 %v383_v56, %v384_v53  ;;  %v372_v51 = vand.u32 4294901760, %v371_v59  ;;  %v4271_v24 = vpack.c.bf16 %v4186_v2, %v4181_v1 }
  0x1e   :  { %3522 = vmatpush3.bf16.msra.mxu0 %v4214_v12  ;;  %v379_v62 = vand.u32 4294901760, %v378_v60  ;;  %v4258_v14 = vpack.c.bf16 %v391_v10, %v384_v53  ;;  %v392_v15 = vsub.f32 %v390_v49, %v391_v10  ;;  %v4275_v25 = vpack.c.bf16 %v4198_v4, %v4191_v3 }
  0x1f   :  { %3524 = vmatprep.subr.bf16.mxu0 %v4220_v16  ;;  %3450 = vmatpush3.bf16.msra.mxu1 %v4214_v12  ;;  %v4262_v17 = vpack.c.bf16 %v365_v11, %v358_v9  ;;  %v386_v18 = vand.u32 4294901760, %v385_v13  ;;  %v4279_v26 = vpack.c.bf16 %v4204_v6, %v4201_v5  ;;  %v4281_v27 = vpack.c.bf16 %v362_v33, %v355_v32 }
  0x20   :  { %3452 = vmatprep.subr.bf16.mxu1 %v4239_v37  ;;  %v4265_v19 = vpack.c.bf16 %v379_v62, %v372_v51  ;;  %v393_v21 = vand.u32 4294901760, %v392_v15  ;;  %v4283_v30 = vpack.c.bf16 %v376_v43, %v369_v40  ;;  %v4285_v31 = vpack.c.bf16 %v390_v49, %v383_v56 }
  0x21   :  { %v105_v39 = vmul.f32 %v4129_v46, %v4089_v34  ;;  %vm154_vm6 = vcmask 261120   ;;  %vm159_vm7 = vcmask 523264   ;;  %vm181_vm8 = vcmask 785408  }
  0x22   :  { %v4267_v23 = vpack.c.bf16 %v393_v21, %v386_v18  ;;  %v107_v6 = vmul.f32 %v4207_v7, %v4166_v61 }
  0x74   :  { %v127_v1 = vpop.permute.xlu0 %126 }
  0x75   :  { %v155_v2 = vsel %vm154_vm6, %v105_v39, %v127_v1 }
  0x78   :  { %v129_v3 = vpop.permute.xlu0 %128  ;;  %v143_v4 = vpop.permute.xlu1 %142 }
  0x79   :  { %v160_v5 = vsel %vm159_vm7, %v155_v2, %v143_v4  ;;  %v156_v34 = vsel %vm154_vm6, %v4159_v58, %v129_v3 }
  0x7a   :  { %v183_v32 = vsel %vm181_vm8, %v160_v5, 0 }
  0x7b   :  { %v4294_v33 = vand.u32 4294901760, %v183_v32 }
  0x7c   :  { %v131_v40 = vpop.permute.xlu0 %130 }
  0x7d   :  { %v4299_v43 = vsub.f32 %v183_v32, %v4294_v33  ;;  %v157_v54 = vsel %vm154_vm6, %v107_v6, %v131_v40 }
  0x7f   :  { %v145_v55 = vpop.permute.xlu1 %144  ;;  %v273_v36 = vand.u32 4294901760, %v4299_v43 }
  0x80   :  { %v161_v56 = vsel %vm159_vm7, %v156_v34, %v145_v55  ;;  %v147_v48 = vpop.permute.xlu0 %146  ;;  %v4469_v55 = vld [vmem:[%s5251_s1 + $0xa0] sm:$0xff] }
  0x81   :  { %v186_v61 = vsel %vm181_vm8, %v161_v56, 0  ;;  %v162_v49 = vsel %vm159_vm7, %v157_v54, %v147_v48  ;;  %3001 = vmatprep.mubr.f32.mxu0 %v273_v36  ;;  %v274_v52 = vsub.f32 %v4299_v43, %v273_v36  ;;  %v4474_v56 = vld [vmem:[%s5251_s1 + $0xa8] sm:$0xff] }
  0x82   :  { %v4306_v42 = vand.u32 4294901760, %v186_v61  ;;  %v189_v58 = vsel %vm181_vm8, %v162_v49, 0  ;;  %v1038_v49 = vand.u32 4294901760, %v4474_v56 }
  0x83   :  { %v133_v53 = vpop.permute.xlu1 %132  ;;  %v4310_v59 = vand.u32 4294901760, %v189_v58  ;;  %v275_v10 = vand.u32 4294901760, %v274_v52 }
  0x84   :  { %v4313_v60 = vsub.f32 %v186_v61, %v4306_v42  ;;  %v158_v9 = vsel %vm154_vm6, %v4173_v63, %v133_v53  ;;  %v1035_v61 = vand.u32 4294901760, %v4469_v55 }
  0x85   :  { %v4318_v11 = vsub.f32 %v189_v58, %v4310_v59  ;;  %2911 = vmatprep.mubr.f32.mxu1 %v275_v10 }
  0x86   :  { %v283_v13 = vand.u32 4294901760, %v4313_v60 }
  0x87   :  { %v149_v51 = vpop.permute.xlu1 %148  ;;  %v293_v62 = vand.u32 4294901760, %v4318_v11 }
  0x88   :  { %v163_v15 = vsel %vm159_vm7, %v158_v9, %v149_v51  ;;  %3002 = vmatmul.mubr.f32.vlgmr.msra.gmra.mrb[0].mxu0 %v283_v13  ;;  %v284_v18 = vsub.f32 %v4313_v60, %v283_v13  ;;  %v4492_v51 = vld [vmem:[%s5251_s1 + $0xb0] sm:$0xff] }
  0x89   :  { %v192_v21 = vsel %vm181_vm8, %v163_v15, 0  ;;  %3526 = vmatpush3.bf16.msra.mxu0 %v4220_v16  ;;  %3004 = vmatprep.mubr.f32.mxu0 %v293_v62  ;;  %v294_v63 = vsub.f32 %v4318_v11, %v293_v62  ;;  %v4497_v62 = vld [vmem:[%s5251_s1 + $0xb8] sm:$0xff] }
  0x8a   :  { %v4327_v39 = vand.u32 4294901760, %v192_v21  ;;  %3528 = vmatprep.subr.bf16.mxu0 %v4226_v20  ;;  %v285_v1 = vand.u32 4294901760, %v284_v18 }
  0x8b   :  { %v295_v2 = vand.u32 4294901760, %v294_v63 }
  0x8c   :  { %v4331_v3 = vsub.f32 %v192_v21, %v4327_v39  ;;  %2912 = vmatmul.mubr.f32.vlgmr.msra.gmra.mrb[0].mxu1 %v285_v1 }
  0x8d   :  { %3454 = vmatpush3.bf16.msra.mxu1 %v4239_v37  ;;  %3530 = vmatpush3.bf16.msra.mxu0 %v4226_v20  ;;  %v4413_v20 = vld [vmem:[%s5251_s1 + $0x78] sm:$0xff] }
  0x8e   :  { %3456 = vmatprep.subr.bf16.mxu1 %v4243_v50  ;;  %3532 = vmatprep.subr.bf16.mxu0 %v4229_v22  ;;  %v303_v16 = vand.u32 4294901760, %v4331_v3 }
  0x8f   :  { %2914 = vmatprep.mubr.f32.mxu1 %v295_v2  ;;  %v1044_v2 = vand.u32 4294901760, %v4497_v62 }
  0x90   :  { %3005 = vmatmul.mubr.f32.gmra.mrb[2].mxu0 %v303_v16  ;;  %v304_v4 = vsub.f32 %v4331_v3, %v303_v16 }
  0x91   :  { %3458 = vmatpush3.bf16.msra.mxu1 %v4243_v50  ;;  %3534 = vmatpush3.bf16.msra.mxu0 %v4229_v22  ;;  %v1020_v50 = vand.u32 4294901760, %v4413_v20 }
  0x92   :  { %3031 = vmatprep.mubr.f32.mxu0 %v4294_v33  ;;  %3460 = vmatprep.subr.bf16.mxu1 %v4247_v35  ;;  %v305_v37 = vand.u32 4294901760, %v304_v4 }
  0x93   :  { %3536 = vmatprep.subr.bf16.mxu0 %v4252_v41 }
  0x94   :  { %2915 = vmatmul.mubr.f32.gmra.mrb[2].mxu1 %v305_v37 }
  0x95   :  { %3462 = vmatpush3.bf16.msra.mxu1 %v4247_v35  ;;  %3538 = vmatpush3.bf16.msra.mxu0 %v4252_v41  ;;  %v4426_v41 = vld [vmem:[%s5251_s1 + $0x80] sm:$0xff] }
  0x96   :  { %2941 = vmatprep.mubr.f32.mxu1 %v4294_v33  ;;  %3464 = vmatprep.subr.bf16.mxu1 %v4262_v17 }
  0x97   :  { %3540 = vmatprep.subr.bf16.mxu0 %v4255_v47 }
  0x99   :  { %3466 = vmatpush3.bf16.msra.mxu1 %v4262_v17  ;;  %3542 = vmatpush3.bf16.msra.mxu0 %v4255_v47  ;;  %v4431_v47 = vld [vmem:[%s5251_s1 + $0x88] sm:$0xff] }
  0x9a   :  { %3468 = vmatprep.subr.bf16.mxu1 %v4265_v19  ;;  %3544 = vmatprep.subr.bf16.mxu0 %v4258_v14  ;;  %v1026_v17 = vand.u32 4294901760, %v4431_v47 }
  0x9d   :  { %3470 = vmatpush3.bf16.msra.mxu1 %v4265_v19  ;;  %3546 = vmatpush3.bf16.msra.mxu0 %v4258_v14  ;;  %v1023_v14 = vand.u32 4294901760, %v4426_v41 }
  0x9e   :  { %3472 = vmatprep.subr.bf16.mxu1 %v4267_v23  ;;  %3548 = vmatprep.subr.bf16.mxu0 %v4065_v28 }
  0xa0   :  { %3032 = vmatmul.mubr.f32.vlgmr.msra.gmra.mrb[0].mxu0 %v4306_v42 }
  0xa1   :  { %3474 = vmatpush3.bf16.msra.mxu1 %v4267_v23  ;;  %3034 = vmatprep.mubr.f32.mxu0 %v4310_v59 }
  0xa2   :  { %3550 = vmatpush3.bf16.msra.mxu0 %v4065_v28  ;;  %3476 = vmatprep.subr.bf16.mxu1 %v4271_v24  ;;  %v2573_v28 = vld [vmem:[%s5251_s1 + $0x60] sm:$0xff] }
  0xa3   :  { %3552 = vmatprep.subr.bf16.mxu0 %v4071_v29 }
  0xa4   :  { %2942 = vmatmul.mubr.f32.vlgmr.msra.gmra.mrb[0].mxu1 %v4306_v42  ;;  %3035 = vmatmul.mubr.f32.gmra.mrb[2].mxu0 %v4327_v39 }
  0xa5   :  { %2944 = vmatprep.mubr.f32.mxu1 %v4310_v59  ;;  %3478 = vmatpush3.bf16.msra.mxu1 %v4271_v24  ;;  %v2572_v24 = vld [vmem:[%s5252_s2] ss:$0 sm:$0xff] }
  0xa6   :  { %3554 = vmatpush3.bf16.msra.mxu0 %v4071_v29  ;;  %3061 = vmatprep.mubr.f32.mxu0 %v4294_v33  ;;  %v2574_v29 = vld [vmem:[%s5251_s1 + $0x68] sm:$0xff] }
  0xa7   :  { %3480 = vmatprep.subr.bf16.mxu1 %v4275_v25  ;;  %3556 = vmatprep.subr.bf16.mxu0 %v4127_v45 }
  0xa8   :  { %2945 = vmatmul.mubr.f32.gmra.mrb[2].mxu1 %v4327_v39 }
  0xa9   :  { %3482 = vmatpush3.bf16.msra.mxu1 %v4275_v25  ;;  %2971 = vmatprep.mubr.f32.mxu1 %v4299_v43  ;;  %v4444_v25 = vpack.c.bf16 %v1026_v17, %v1023_v14 }
  0xaa   :  { %3558 = vmatpush3.bf16.msra.mxu0 %v4127_v45  ;;  %3484 = vmatprep.subr.bf16.mxu1 %v4279_v26  ;;  %v1011_v45 = vand.u32 4294901760, %v2573_v28 }
  0xab   :  { %3560 = vmatprep.subr.bf16.mxu0 %v4153_v57 }
  0xac   :  { %v4486_v10 = vsub.f32 %v2573_v28, %v1011_v45 }
  0xad   :  { %3486 = vmatpush3.bf16.msra.mxu1 %v4279_v26  ;;  %v4449_v26 = vld [vmem:[%s5251_s1 + $0x90] sm:$0xff] }
  0xae   :  { %3562 = vmatpush3.bf16.msra.mxu0 %v4153_v57  ;;  %3488 = vmatprep.subr.bf16.mxu1 %v4281_v27  ;;  %v1014_v57 = vand.u32 4294901760, %v2574_v29 }
  0xaf   :  { %3564 = vmatprep.subr.bf16.mxu0 %v4176_v0 }
  0xb0   :  { %v4499_v15 = vsub.f32 %v2574_v29, %v1014_v57 }
  0xb1   :  { %3490 = vmatpush3.bf16.msra.mxu1 %v4281_v27  ;;  %v4454_v27 = vld [vmem:[%s5251_s1 + $0x98] sm:$0xff] }
  0xb2   :  { %3566 = vmatpush3.bf16.msra.mxu0 %v4176_v0  ;;  %3492 = vmatprep.subr.bf16.mxu1 %v4283_v30  ;;  %v4401_v0 = vpack.c.bf16 %v1014_v57, %v1011_v45  ;;  %v1032_v5 = vand.u32 4294901760, %v4454_v27  ;;  %v1137_v16 = vand.u32 4294901760, %v4499_v15 }
  0xb3   :  { %3568 = vmatprep.subr.bf16.mxu0 %v4214_v12 }
  0xb5   :  { %3494 = vmatpush3.bf16.msra.mxu1 %v4283_v30 }
  0xb6   :  { %3570 = vmatpush3.bf16.msra.mxu0 %v4214_v12  ;;  %3496 = vmatprep.subr.bf16.mxu1 %v4285_v31  ;;  %v4408_v12 = vld [vmem:[%s5251_s1 + $0x70] sm:$0xff] }
  0xb7   :  { %v1017_v22 = vand.u32 4294901760, %v4408_v12 }
  0xb9   :  { %3062 = vmatmul.mubr.f32.vlgmr.msra.gmra.mrb[0].mxu0 %v4306_v42  ;;  %3498 = vmatpush3.bf16.msra.mxu1 %v4285_v31  ;;  %v4421_v35 = vpack.c.bf16 %v1020_v50, %v1017_v22  ;;  %v1029_v31 = vand.u32 4294901760, %v4449_v26  ;;  %v4517_v29 = vsub.f32 %v4408_v12, %v1017_v22  ;;  %v1138_v12 = vsub.f32 %v4499_v15, %v1137_v16 }
  0xba   :  { %3064 = vmatprep.mubr.f32.mxu0 %v4310_v59  ;;  %3572 = vmatprep.subr.bf16.mxu1 %v4401_v0 }
  0xbb   :  { %v4464_v43 = vpack.c.bf16 %v1032_v5, %v1029_v31  ;;  %v1144_v22 = vand.u32 4294901760, %v4517_v29 }
  0xbc   :  { %2972 = vmatmul.mubr.f32.vlgmr.msra.gmra.mrb[0].mxu1 %v4313_v60  ;;  %v4484_v60 = vpack.c.bf16 %v1038_v49, %v1035_v61 }
  0xbd   :  { %3065 = vmatmul.mubr.f32.gmra.mrb[2].mxu0 %v4327_v39  ;;  %2974 = vmatprep.mubr.f32.mxu1 %v4318_v11  ;;  %v1041_v39 = vand.u32 4294901760, %v4492_v51 }
  0xbe   :  { %3574 = vmatpush3.bf16.msra.mxu1 %v4401_v0 }
  0xbf   :  { %3576 = vmatprep.subr.bf16.mxu1 %v4421_v35 }
  0xc0   :  { %2975 = vmatmul.mubr.f32.gmra.mrb[2].mxu1 %v4331_v3  ;;  %v1130_v3 = vand.u32 4294901760, %v4486_v10 }
  0xc2   :  { %3578 = vmatpush3.bf16.msra.mxu1 %v4421_v35 }
  0xc3   :  { %3580 = vmatprep.subr.bf16.mxu1 %v4444_v25 }
  0xc6   :  { %3582 = vmatpush3.bf16.msra.mxu1 %v4444_v25 }
  0xc7   :  { %3584 = vmatprep.subr.bf16.mxu1 %v4464_v43 }
  0xca   :  { %3586 = vmatpush3.bf16.msra.mxu1 %v4464_v43 }
  0xcb   :  { %3588 = vmatprep.subr.bf16.mxu1 %v4484_v60 }
  0xce   :  { %3590 = vmatpush3.bf16.msra.mxu1 %v4484_v60 }
 0x18c   :  { %v3063_v19 = vpop.f32.mrb[0].mxu0 }
 0x18d   :  { %v890_v23 = vpop.f32.mrb[1].mxu0 }
 0x18f   :  { %v2973_v30 = vpop.f32.mrb[0].mxu1 }
 0x190   :  { %v3859_v6 = vadd.f32 %v2973_v30, %v2572_v24  ;;  %v3066_v32 = vpop.f32.mrb[2].mxu0  ;;  %v552_v33 = vpop.f32.mrb[1].mxu1 }
 0x191   :  { %v3861_v40 = vadd.f32 %v2572_v24, %v552_v33  ;;  %v902_v34 = vpop.f32.mrb[3].mxu0 }
 0x192   :  { %v3860_v54 = vadd.f32 %v3859_v6, %v3063_v19  ;;  %v4523_v19 = vpack.c.bf16 %v1044_v2, %v1041_v39 }
 0x193   :  { %v3862_v36 = vadd.f32 %v3861_v40, %v890_v23  ;;  %v2976_v48 = vpop.f32.mrb[2].mxu1  ;;  %v1131_v23 = vsub.f32 %v4486_v10, %v1130_v3  ;;  %v4543_v40 = vsub.f32 %v4413_v20, %v1020_v50  ;;  %v1139_v20 = vand.u32 4294901760, %v1138_v12 }
 0x194   :  { %v913_v42 = vmax.f32 %v3860_v54, 0.0  ;;  %v3863_v58 = vadd.f32 %v2976_v48, %v2572_v24  ;;  %v566_v52 = vpop.f32.mrb[3].mxu1  ;;  %3592 = vmatprep.subr.bf16.mxu1 %v4523_v19  ;;  %v1145_v50 = vsub.f32 %v4517_v29, %v1144_v22 }
 0x195   :  { %v912_v53 = vmax.f32 %v3862_v36, 0.0  ;;  %v3865_v59 = vadd.f32 %v2572_v24, %v566_v52  ;;  %v1132_v33 = vand.u32 4294901760, %v1131_v23  ;;  %3594 = vmatpush3.bf16.msra.mxu1 %v4523_v19  ;;  %v4567_v52 = vsub.f32 %v4426_v41, %v1023_v14 }
 0x196   :  { %v917_v9 = vrot.slane %v913_v42, 7  ;;  %v3864_v11 = vadd.f32 %v3863_v58, %v3066_v32  ;;  %946 = vrot.lane.b32.xlu1 %v913_v42, %s3961_s18  ;;  %v929_v13 = vrot.slane %v913_v42, 1  ;;  %v1151_v58 = vand.u32 4294901760, %v4543_v40 }
 0x197   :  { %v916_v18 = vrot.slane %v912_v53, 7  ;;  %v3866_v21 = vadd.f32 %v3865_v59, %v902_v34  ;;  %944 = vrot.lane.b32.xlu0 %v912_v53, %s3961_s18  ;;  %v928_v63 = vrot.slane %v912_v53, 1  ;;  %v4570_v53 = vpack.c.bf16 %v1139_v20, %v1132_v33 }
 0x198   :  { %v915_v1 = vmax.f32 %v3864_v11, 0.0  ;;  %v4575_v59 = vsub.f32 %v4431_v47, %v1026_v17  ;;  %v1152_v11 = vsub.f32 %v4543_v40, %v1151_v58  ;;  %v4584_v41 = vsub.f32 %v4449_v26, %v1029_v31 }
 0x199   :  { %v914_v4 = vmax.f32 %v3866_v21, 0.0  ;;  %v934_v37 = vsel %vm113_vm0, %v928_v63, %v929_v13  ;;  %v4512_v28 = vsel %vm100_vm1, %v916_v18, %v917_v9  ;;  %3596 = vmatprep.subr.bf16.mxu1 %v4570_v53  ;;  %v4591_v47 = vsub.f32 %v4454_v27, %v1032_v5 }
 0x19a   :  { %v919_v45 = vrot.slane %v915_v1, 7  ;;  %v931_v57 = vrot.slane %v915_v1, 1  ;;  %v1165_v14 = vand.u32 4294901760, %v4575_v59  ;;  %v1153_v17 = vand.u32 4294901760, %v1152_v11 }
 0x19b   :  { %v918_v24 = vrot.slane %v914_v4, 7  ;;  %v930_v30 = vrot.slane %v914_v4, 1  ;;  %960 = vrot.lane.b32.xlu0 %v934_v37, %s3962_s5  ;;  %v1172_v21 = vand.u32 4294901760, %v4584_v41  ;;  %v1179_v31 = vand.u32 4294901760, %v4591_v47 }
 0x19c   :  { %v935_v6 = vsel %vm113_vm0, %v931_v57, %v928_v63  ;;  %v4537_v32 = vsel %vm100_vm1, %v919_v45, %v916_v18  ;;  %v1166_v26 = vsub.f32 %v4575_v59, %v1165_v14  ;;  %v4659_v11 = vpack.c.bf16 %v4499_v15, %v4486_v10 }
 0x19d   :  { %v933_v34 = vsel %vm113_vm0, %v929_v13, %v930_v30  ;;  %v932_v54 = vsel %vm113_vm0, %v930_v30, %v931_v57  ;;  %v4553_v48 = vsel %vm100_vm1, %v917_v9, %v918_v24  ;;  %v4557_v42 = vsel %vm100_vm1, %v918_v24, %v919_v45 }
 0x19e   :  { %v937_v36 = vmul.f32 %v4101_v38, %v933_v34  ;;  %v1146_v9 = vand.u32 4294901760, %v1145_v50  ;;  %v1158_v13 = vand.u32 4294901760, %v4567_v52  ;;  %v1173_v5 = vsub.f32 %v4584_v41, %v1172_v21 }
 0x19f   :  { %948 = vrot.lane.b32.xlu0 %v914_v4, %s3961_s18  ;;  %v4611_v4 = vsub.f32 %v4469_v55, %v1035_v61  ;;  %v1167_v37 = vand.u32 4294901760, %v1166_v26  ;;  %v1180_v45 = vsub.f32 %v4591_v47, %v1179_v31  ;;  %v4620_v57 = vsub.f32 %v4474_v56, %v1038_v49 }
 0x1a0   :  { %962 = vrot.lane.b32.xlu1 %v937_v36, %s3962_s5  ;;  %v1159_v18 = vsub.f32 %v4567_v52, %v1158_v13  ;;  %v4603_v63 = vpack.c.bf16 %v1153_v17, %v1146_v9  ;;  %v1174_v23 = vand.u32 4294901760, %v1173_v5  ;;  %v4638_v56 = vsub.f32 %v4497_v62, %v1044_v2 }
 0x1a1   :  { %v5257_v24 = vand.u32 4294901760, %v4611_v4  ;;  %v1181_v55 = vand.u32 4294901760, %v1180_v45  ;;  %v5256_v61 = vand.u32 4294901760, %v4620_v57  ;;  %v4663_v17 = vpack.c.bf16 %v4543_v40, %v4517_v29 }
 0x1a2   :  { %v1160_v27 = vand.u32 4294901760, %v1159_v18  ;;  %v5254_v36 = vand.u32 4294901760, %v4638_v56  ;;  %v4667_v18 = vpack.c.bf16 %v4575_v59, %v4567_v52  ;;  %v4671_v26 = vpack.c.bf16 %v4591_v47, %v4584_v41  ;;  %v4833_v52 = vld [vmem:[%s5251_s1 + $0xd8] sm:$0xff]  ;;  %v4848_v47 = vld [vmem:[%s5251_s1 + $0xe8] sm:$0xff] }
 0x1a3   :  { %964 = vrot.lane.b32.xlu0 %v932_v54, %s3962_s5  ;;  %v1187_v12 = vsub.f32 %v4611_v4, %v5257_v24  ;;  %v4640_v49 = vpack.c.bf16 %v1181_v55, %v1174_v23  ;;  %v1194_v33 = vsub.f32 %v4620_v57, %v5256_v61  ;;  %v3675_v10 = vpack.c.bf16 %v1165_v14, %v1158_v13  ;;  %v4843_v14 = vld [vmem:[%s5251_s1 + $0xe0] sm:$0xff] }
 0x1a4   :  { %950 = vrot.lane.b32.xlu1 %v915_v1, %s3961_s18  ;;  %v939_v1 = vmul.f32 %v4123_v44, %v935_v6  ;;  %v4624_v30 = vpack.c.bf16 %v1167_v37, %v1160_v27  ;;  %v4633_v6 = vsub.f32 %v4492_v51, %v1041_v39  ;;  %v1208_v62 = vsub.f32 %v4638_v56, %v5254_v36 }
 0x1a5   :  { %v1188_v34 = vand.u32 4294901760, %v1187_v12  ;;  %v1195_v20 = vand.u32 4294901760, %v1194_v33  ;;  %v4675_v27 = vpack.c.bf16 %v4620_v57, %v4611_v4  ;;  %v924_v37 = vmul.f32 %v4129_v46, %v4537_v32 }
 0x1a6   :  { %v5255_v54 = vand.u32 4294901760, %v4633_v6  ;;  %v1209_v50 = vand.u32 4294901760, %v1208_v62  ;;  %v4679_v5 = vpack.c.bf16 %v4638_v56, %v4633_v6  ;;  %v926_v32 = vmul.f32 %v4207_v7, %v4553_v48 }
 0x1a7   :  { %v4653_v39 = vpack.c.bf16 %v1195_v20, %v1188_v34  ;;  %v3679_v15 = vpack.c.bf16 %v1179_v31, %v1172_v21  ;;  %v5263_v40 = vand.u32 4294901760, %v4638_v56  ;;  %v1836_v13 = vand.u32 4294901760, %v4833_v52 }
 0x1a8   :  { %966 = vrot.lane.b32.xlu1 %v939_v1, %s3962_s5  ;;  %v1201_v51 = vsub.f32 %v4633_v6, %v5255_v54  ;;  %v1839_v21 = vand.u32 4294901760, %v4843_v14  ;;  %v1842_v31 = vand.u32 4294901760, %v4848_v47 }
 0x1aa   :  { %v1202_v2 = vand.u32 4294901760, %v1201_v51  ;;  %v4989_v8 = vsub.f32 %v4848_v47, %v1842_v31 }
 0x1ac   :  { %v4655_v9 = vpack.c.bf16 %v1209_v50, %v1202_v2 }
 0x208   :  { %v947_v55 = vpop.permute.xlu1 %946 }
 0x209   :  { %v945_v1 = vpop.permute.xlu0 %944  ;;  %v973_v51 = vsel %vm154_vm6, %v4512_v28, %v947_v55 }
 0x20a   :  { %v972_v45 = vsel %vm154_vm6, %v924_v37, %v945_v1 }
 0x20d   :  { %v961_v23 = vpop.permute.xlu0 %960 }
 0x20e   :  { %v976_v12 = vsel %vm159_vm7, %v972_v45, %v961_v23 }
 0x20f   :  { %v999_v33 = vsel %vm181_vm8, %v976_v12, 0 }
 0x210   :  { %v4686_v34 = vand.u32 4294901760, %v999_v33 }
 0x211   :  { %v949_v20 = vpop.permute.xlu0 %948 }
 0x212   :  { %v4691_v62 = vsub.f32 %v999_v33, %v4686_v34  ;;  %v963_v2 = vpop.permute.xlu1 %962  ;;  %v974_v45 = vsel %vm154_vm6, %v926_v32, %v949_v20 }
 0x213   :  { %v977_v50 = vsel %vm159_vm7, %v973_v51, %v963_v2 }
 0x214   :  { %v1002_v1 = vsel %vm181_vm8, %v977_v50, 0  ;;  %v1089_v37 = vand.u32 4294901760, %v4691_v62 }
 0x215   :  { %v4699_v23 = vand.u32 4294901760, %v1002_v1  ;;  %v965_v12 = vpop.permute.xlu0 %964 }
 0x216   :  { %v978_v28 = vsel %vm159_vm7, %v974_v45, %v965_v12  ;;  %v951_v55 = vpop.permute.xlu1 %950  ;;  %v1090_v33 = vsub.f32 %v4691_v62, %v1089_v37 }
 0x217   :  { %v4706_v48 = vsub.f32 %v1002_v1, %v4699_v23  ;;  %v1005_v51 = vsel %vm181_vm8, %v978_v28, 0  ;;  %v975_v45 = vsel %vm154_vm6, %v4557_v42, %v951_v55 }
 0x218   :  { %v4709_v2 = vand.u32 4294901760, %v1005_v51  ;;  %v1091_v50 = vand.u32 4294901760, %v1090_v33 }
 0x219   :  { %v1099_v20 = vand.u32 4294901760, %v4706_v48 }
 0x21a   :  { %v4713_v32 = vsub.f32 %v1005_v51, %v4709_v2  ;;  %3091 = vmatprep.mubr.f32.mxu1 %v1091_v50  ;;  %v967_v12 = vpop.permute.xlu1 %966 }
 0x21b   :  { %v1100_v1 = vsub.f32 %v4706_v48, %v1099_v20  ;;  %v979_v36 = vsel %vm159_vm7, %v975_v45, %v967_v12  ;;  %v4911_v45 = vld [vmem:[%s5251_s1 + $0x110] sm:$0xff]  ;;  %v4916_v12 = vld [vmem:[%s5251_s1 + $0x118] sm:$0xff] }
 0x21c   :  { %v1008_v28 = vsel %vm181_vm8, %v979_v36, 0  ;;  %v1109_v33 = vand.u32 4294901760, %v4713_v32 }
 0x21d   :  { %v1101_v54 = vand.u32 4294901760, %v1100_v1  ;;  %v4723_v61 = vand.u32 4294901760, %v1008_v28 }
 0x21e   :  { %v1110_v51 = vsub.f32 %v4713_v32, %v1109_v33 }
 0x21f   :  { %v1118_v24 = vsub.f32 %v1008_v28, %v4723_v61  ;;  %3092 = vmatmul.mubr.f32.vlgmr.msra.gmra.mrb[4].mxu1 %v1101_v54 }
 0x220   :  { %3598 = vmatpush3.bf16.msra.mxu1 %v4570_v53  ;;  %v1111_v42 = vand.u32 4294901760, %v1110_v51  ;;  %v3667_v53 = vpack.c.bf16 %v1137_v16, %v1130_v3  ;;  %v5260_v3 = vand.u32 4294901760, %v4611_v4  ;;  %v5261_v16 = vand.u32 4294901760, %v4620_v57  ;;  %v4864_v57 = vld [vmem:[%s5251_s1 + $0xf0] sm:$0xff] }
 0x221   :  { %3600 = vmatprep.subr.bf16.mxu1 %v4603_v63  ;;  %v1119_v55 = vand.u32 4294901760, %v1118_v24  ;;  %v4858_v4 = vpack.c.bf16 %v1842_v31, %v1839_v21  ;;  %v1857_v51 = vand.u32 4294901760, %v4911_v45 }
 0x222   :  { %3094 = vmatprep.mubr.f32.mxu1 %v1111_v42  ;;  %v3683_v29 = vpack.c.bf16 %v5261_v16, %v5260_v3 }
 0x223   :  { %v1120_v50 = vsub.f32 %v1118_v24, %v1119_v55 }
 0x224   :  { %3602 = vmatpush3.bf16.msra.mxu1 %v4603_v63  ;;  %v3671_v63 = vpack.c.bf16 %v1151_v58, %v1144_v22  ;;  %v5262_v22 = vand.u32 4294901760, %v4633_v6 }
 0x225   :  { %3604 = vmatprep.subr.bf16.mxu1 %v4624_v30  ;;  %v1121_v36 = vand.u32 4294901760, %v1120_v50 }
 0x226   :  { %v3687_v58 = vpack.c.bf16 %v5263_v40, %v5262_v22 }
 0x227   :  { %3095 = vmatmul.mubr.f32.gmra.mrb[6].mxu1 %v1121_v36 }
 0x228   :  { %3606 = vmatpush3.bf16.msra.mxu1 %v4624_v30  ;;  %3121 = vmatprep.mubr.f32.mxu1 %v4686_v34  ;;  %v2585_v30 = vld [vmem:[%s5252_s2 + $0x1] ss:$0 sm:$0xff] }
 0x229   :  { %3608 = vmatprep.subr.bf16.mxu1 %v4640_v49 }
 0x22c   :  { %3610 = vmatpush3.bf16.msra.mxu1 %v4640_v49 }
 0x22d   :  { %3612 = vmatprep.subr.bf16.mxu1 %v4653_v39 }
 0x230   :  { %3614 = vmatpush3.bf16.msra.mxu1 %v4653_v39 }
 0x231   :  { %3616 = vmatprep.subr.bf16.mxu1 %v4655_v9 }
 0x234   :  { %3618 = vmatpush3.bf16.msra.mxu1 %v4655_v9  ;;  %v4886_v9 = vld [vmem:[%s5251_s1 + $0x100] sm:$0xff] }
 0x235   :  { %3620 = vmatprep.subr.bf16.mxu1 %v4659_v11 }
 0x237   :  { %3122 = vmatmul.mubr.f32.vlgmr.msra.gmra.mrb[4].mxu1 %v4699_v23 }
 0x238   :  { %3124 = vmatprep.mubr.f32.mxu1 %v4709_v2  ;;  %3622 = vmatpush3.bf16.msra.mxu1 %v4659_v11  ;;  %v4891_v11 = vld [vmem:[%s5251_s1 + $0x108] sm:$0xff] }
 0x239   :  { %3624 = vmatprep.subr.bf16.mxu1 %v4663_v17 }
 0x23b   :  { %3125 = vmatmul.mubr.f32.gmra.mrb[6].mxu1 %v4723_v61 }
 0x23c   :  { %3626 = vmatpush3.bf16.msra.mxu1 %v4663_v17  ;;  %3151 = vmatprep.mubr.f32.mxu1 %v4691_v62 }
 0x23d   :  { %3628 = vmatprep.subr.bf16.mxu1 %v4667_v18 }
 0x240   :  { %3630 = vmatpush3.bf16.msra.mxu1 %v4667_v18  ;;  %v1851_v18 = vand.u32 4294901760, %v4886_v9 }
 0x241   :  { %3632 = vmatprep.subr.bf16.mxu1 %v4671_v26 }
 0x244   :  { %3634 = vmatpush3.bf16.msra.mxu1 %v4671_v26  ;;  %v1854_v26 = vand.u32 4294901760, %v4891_v11 }
 0x245   :  { %3636 = vmatprep.subr.bf16.mxu1 %v4675_v27 }
 0x246   :  { %v4901_v62 = vpack.c.bf16 %v1854_v26, %v1851_v18 }
 0x248   :  { %3638 = vmatpush3.bf16.msra.mxu1 %v4675_v27 }
 0x249   :  { %3640 = vmatprep.subr.bf16.mxu1 %v4679_v5 }
 0x24c   :  { %3642 = vmatpush3.bf16.msra.mxu1 %v4679_v5 }
 0x24d   :  { %3644 = vmatprep.subr.bf16.mxu1 %v4401_v0 }
 0x24f   :  { %3152 = vmatmul.mubr.f32.vlgmr.msra.gmra.mrb[4].mxu1 %v4706_v48 }
 0x250   :  { %3154 = vmatprep.mubr.f32.mxu1 %v4713_v32  ;;  %3646 = vmatpush3.bf16.msra.mxu1 %v4401_v0 }
 0x251   :  { %3648 = vmatprep.subr.bf16.mxu1 %v4421_v35 }
 0x253   :  { %3155 = vmatmul.mubr.f32.gmra.mrb[6].mxu1 %v1118_v24  ;;  %v4869_v24 = vld [vmem:[%s5251_s1 + $0xf8] sm:$0xff] }
 0x254   :  { %3650 = vmatpush3.bf16.msra.mxu1 %v4421_v35  ;;  %3181 = vmatprep.mubr.f32.mxu1 %v1089_v37  ;;  %v1848_v6 = vand.u32 4294901760, %v4869_v24 }
 0x255   :  { %3652 = vmatprep.subr.bf16.mxu1 %v4444_v25 }
 0x256   :  { %v5005_v47 = vsub.f32 %v4869_v24, %v1848_v6 }
 0x258   :  { %3654 = vmatpush3.bf16.msra.mxu1 %v4444_v25 }
 0x259   :  { %3656 = vmatprep.subr.bf16.mxu1 %v4464_v43 }
 0x25c   :  { %3658 = vmatpush3.bf16.msra.mxu1 %v4464_v43 }
 0x25d   :  { %3660 = vmatprep.subr.bf16.mxu1 %v4484_v60 }
 0x260   :  { %3662 = vmatpush3.bf16.msra.mxu1 %v4484_v60 }
 0x261   :  { %3664 = vmatprep.subr.bf16.mxu1 %v4523_v19 }
 0x264   :  { %3666 = vmatpush3.bf16.msra.mxu1 %v4523_v19 }
 0x265   :  { %3668 = vmatprep.subr.bf16.mxu1 %v3667_v53 }
 0x267   :  { %3182 = vmatmul.mubr.f32.vlgmr.msra.gmra.mrb[4].mxu1 %v1099_v20 }
 0x268   :  { %3184 = vmatprep.mubr.f32.mxu1 %v1109_v33  ;;  %3670 = vmatpush3.bf16.msra.mxu1 %v3667_v53 }
 0x269   :  { %3672 = vmatprep.subr.bf16.mxu1 %v3671_v63 }
 0x26b   :  { %3185 = vmatmul.mubr.f32.gmra.mrb[6].mxu1 %v1119_v55  ;;  %v1860_v55 = vand.u32 4294901760, %v4916_v12 }
 0x26c   :  { %3674 = vmatpush3.bf16.msra.mxu1 %v3671_v63  ;;  %3211 = vmatprep.mubr.f32.mxu1 %v4686_v34 }
 0x26d   :  { %3676 = vmatprep.subr.bf16.mxu1 %v3675_v10 }
 0x270   :  { %3678 = vmatpush3.bf16.msra.mxu1 %v3675_v10 }
 0x271   :  { %3680 = vmatprep.subr.bf16.mxu1 %v3679_v15 }
 0x274   :  { %3682 = vmatpush3.bf16.msra.mxu1 %v3679_v15 }
 0x275   :  { %3684 = vmatprep.subr.bf16.mxu1 %v3683_v29 }
 0x278   :  { %3686 = vmatpush3.bf16.msra.mxu1 %v3683_v29  ;;  %v4937_v29 = vpack.c.bf16 %v1860_v55, %v1857_v51 }
 0x279   :  { %3688 = vmatprep.subr.bf16.mxu1 %v3687_v58 }
 0x27c   :  { %3690 = vmatpush3.bf16.msra.mxu1 %v3687_v58 }
 0x27d   :  { %3692 = vmatprep.subr.bf16.mxu1 %v4401_v0 }
 0x27f   :  { %3212 = vmatmul.mubr.f32.vlgmr.msra.gmra.mrb[4].mxu1 %v4699_v23 }
 0x280   :  { %3214 = vmatprep.mubr.f32.mxu1 %v4709_v2  ;;  %3694 = vmatpush3.bf16.msra.mxu1 %v4401_v0  ;;  %v2586_v0 = vld [vmem:[%s5251_s1 + $0xc0] sm:$0xff] }
 0x281   :  { %3696 = vmatprep.subr.bf16.mxu1 %v4421_v35 }
 0x283   :  { %3215 = vmatmul.mubr.f32.gmra.mrb[6].mxu1 %v4723_v61 }
 0x284   :  { %3698 = vmatpush3.bf16.msra.mxu1 %v4421_v35  ;;  %3241 = vmatprep.mubr.f32.mxu1 %v4686_v34  ;;  %v2587_v35 = vld [vmem:[%s5251_s1 + $0xc8] sm:$0xff] }
 0x285   :  { %3700 = vmatprep.subr.bf16.mxu1 %v4444_v25 }
 0x288   :  { %3702 = vmatpush3.bf16.msra.mxu1 %v4444_v25  ;;  %v1827_v25 = vand.u32 4294901760, %v2586_v0 }
 0x289   :  { %3704 = vmatprep.subr.bf16.mxu1 %v4464_v43 }
 0x28a   :  { %v4903_v37 = vsub.f32 %v2586_v0, %v1827_v25 }
 0x28c   :  { %3706 = vmatpush3.bf16.msra.mxu1 %v4464_v43  ;;  %v1830_v43 = vand.u32 4294901760, %v2587_v35  ;;  %v1946_v50 = vand.u32 4294901760, %v4903_v37 }
 0x28d   :  { %3708 = vmatprep.subr.bf16.mxu1 %v4484_v60 }
 0x28e   :  { %v1947_v22 = vsub.f32 %v4903_v37, %v1946_v50 }
 0x290   :  { %3710 = vmatpush3.bf16.msra.mxu1 %v4484_v60  ;;  %v4823_v60 = vpack.c.bf16 %v1830_v43, %v1827_v25 }
 0x291   :  { %3712 = vmatprep.subr.bf16.mxu1 %v4523_v19 }
 0x292   :  { %3716 = vmatprep.subr.bf16.mxu0 %v4823_v60 }
 0x293   :  { %3718 = vmatpush3.bf16.msra.mxu0 %v4823_v60 }
 0x294   :  { %3714 = vmatpush3.bf16.msra.mxu1 %v4523_v19  ;;  %v2588_v19 = vld [vmem:[%s5251_s1 + $0xd0] sm:$0xff] }
 0x295   :  { %v1833_v59 = vand.u32 4294901760, %v2588_v19 }
 0x297   :  { %3242 = vmatmul.mubr.f32.vlgmr.msra.gmra.mrb[4].mxu1 %v4699_v23  ;;  %v4838_v41 = vpack.c.bf16 %v1836_v13, %v1833_v59  ;;  %v4905_v23 = vsub.f32 %v2587_v35, %v1830_v43  ;;  %v4931_v15 = vsub.f32 %v2588_v19, %v1833_v59  ;;  %v1948_v19 = vand.u32 4294901760, %v1947_v22 }
 0x298   :  { %3244 = vmatprep.mubr.f32.mxu1 %v4709_v2  ;;  %v4957_v59 = vsub.f32 %v4833_v52, %v1836_v13 }
 0x299   :  { %3720 = vmatprep.subr.bf16.mxu0 %v4838_v41  ;;  %v1953_v36 = vand.u32 4294901760, %v4905_v23  ;;  %v1960_v35 = vand.u32 4294901760, %v4931_v15 }
 0x29a   :  { %3722 = vmatpush3.bf16.msra.mxu0 %v4838_v41 }
 0x29b   :  { %3245 = vmatmul.mubr.f32.gmra.mrb[6].mxu1 %v4723_v61  ;;  %3724 = vmatprep.subr.bf16.mxu0 %v4858_v4  ;;  %v1845_v61 = vand.u32 4294901760, %v4864_v57  ;;  %v1954_v0 = vsub.f32 %v4905_v23, %v1953_v36  ;;  %v1961_v13 = vsub.f32 %v4931_v15, %v1960_v35 }
 0x29d   :  { %v4881_v49 = vpack.c.bf16 %v1848_v6, %v1845_v61  ;;  %v1955_v52 = vand.u32 4294901760, %v1954_v0 }
 0x29e   :  { %3726 = vmatpush3.bf16.msra.mxu0 %v4858_v4 }
 0x29f   :  { %3728 = vmatprep.subr.bf16.mxu0 %v4881_v49 }
 0x2a2   :  { %3730 = vmatpush3.bf16.msra.mxu0 %v4881_v49 }
 0x2a3   :  { %3732 = vmatprep.subr.bf16.mxu0 %v4901_v62 }
 0x2a6   :  { %3734 = vmatpush3.bf16.msra.mxu0 %v4901_v62 }
 0x2a7   :  { %3736 = vmatprep.subr.bf16.mxu0 %v4937_v29 }
 0x2aa   :  { %3738 = vmatpush3.bf16.msra.mxu0 %v4937_v29 }
 0x36a   :  { %v3243_v56 = vpop.f32.mrb[4].mxu1 }
 0x36b   :  { %v3867_v54 = vadd.f32 %v3243_v56, %v2585_v30  ;;  %v1706_v39 = vpop.f32.mrb[5].mxu1 }
 0x36c   :  { %v3868_v17 = vadd.f32 %v2585_v30, %v1706_v39 }
 0x36d   :  { %v1729_v27 = vmax.f32 %v3867_v54, 0.0 }
 0x36e   :  { %v1728_v5 = vmax.f32 %v3868_v17, 0.0  ;;  %v3246_v34 = vpop.f32.mrb[6].mxu1 }
 0x36f   :  { %v1733_v48 = vrot.slane %v1729_v27, 7  ;;  %v1745_v2 = vrot.slane %v1729_v27, 1  ;;  %v3869_v20 = vadd.f32 %v3246_v34, %v2585_v30  ;;  %1762 = vrot.lane.b32.xlu1 %v1729_v27, %s3961_s18  ;;  %v1718_v32 = vpop.f32.mrb[7].mxu1  ;;  %v1967_v27 = vand.u32 4294901760, %v4957_v59 }
 0x370   :  { %v1732_v1 = vrot.slane %v1728_v5, 7  ;;  %v1744_v28 = vrot.slane %v1728_v5, 1  ;;  %v3870_v33 = vadd.f32 %v2585_v30, %v1718_v32  ;;  %1760 = vrot.lane.b32.xlu0 %v1728_v5, %s3961_s18  ;;  %v4984_v5 = vpack.c.bf16 %v1955_v52, %v1948_v19 }
 0x371   :  { %v1731_v42 = vmax.f32 %v3869_v20, 0.0  ;;  %v1962_v34 = vand.u32 4294901760, %v1961_v13  ;;  %v5073_v52 = vpack.c.bf16 %v4905_v23, %v4903_v37  ;;  %v5077_v13 = vpack.c.bf16 %v4957_v59, %v4931_v15 }
 0x372   :  { %v1730_v53 = vmax.f32 %v3870_v33, 0.0  ;;  %v1750_v63 = vsel %vm113_vm0, %v1744_v28, %v1745_v2  ;;  %v4929_v10 = vsel %vm100_vm1, %v1732_v1, %v1733_v48  ;;  %3740 = vmatprep.subr.bf16.mxu0 %v4984_v5 }
 0x373   :  { %v1735_v3 = vrot.slane %v1731_v42, 7  ;;  %v1747_v16 = vrot.slane %v1731_v42, 1 }
 0x374   :  { %v1734_v40 = vrot.slane %v1730_v53, 7  ;;  %v1746_v58 = vrot.slane %v1730_v53, 1  ;;  %1776 = vrot.lane.b32.xlu0 %v1750_v63, %s3962_s5  ;;  %v5034_v63 = vsub.f32 %v4891_v11, %v1854_v26  ;;  %v5052_v11 = vsub.f32 %v4916_v12, %v1860_v55 }
 0x375   :  { %v1751_v25 = vsel %vm113_vm0, %v1747_v16, %v1744_v28  ;;  %v4951_v43 = vsel %vm100_vm1, %v1735_v3, %v1732_v1  ;;  %v5025_v28 = vsub.f32 %v4886_v9, %v1851_v18 }
 0x376   :  { %v1749_v30 = vsel %vm113_vm0, %v1745_v2, %v1746_v58  ;;  %v1748_v56 = vsel %vm113_vm0, %v1746_v58, %v1747_v16  ;;  %v4967_v39 = vsel %vm100_vm1, %v1733_v48, %v1734_v40  ;;  %v4971_v17 = vsel %vm100_vm1, %v1734_v40, %v1735_v3 }
 0x377   :  { %v1753_v54 = vmul.f32 %v4101_v38, %v1749_v30  ;;  %v4981_v38 = vsub.f32 %v4843_v14, %v1839_v21  ;;  %v1968_v48 = vsub.f32 %v4957_v59, %v1967_v27  ;;  %v4998_v14 = vsub.f32 %v4864_v57, %v1845_v61 }
 0x378   :  { %1764 = vrot.lane.b32.xlu0 %v1730_v53, %s3961_s18  ;;  %v1981_v21 = vand.u32 4294901760, %v4989_v8  ;;  %v1995_v61 = vand.u32 4294901760, %v5005_v47  ;;  %v1755_v33 = vmul.f32 %v4123_v44, %v1751_v25  ;;  %v2002_v16 = vand.u32 4294901760, %v5025_v28 }
 0x379   :  { %1778 = vrot.lane.b32.xlu1 %v1753_v54, %s3962_s5  ;;  %v1974_v2 = vand.u32 4294901760, %v4981_v38  ;;  %v1969_v31 = vand.u32 4294901760, %v1968_v48  ;;  %v1988_v32 = vand.u32 4294901760, %v4998_v14  ;;  %v2009_v44 = vand.u32 4294901760, %v5034_v63 }
 0x37a   :  { %v1982_v57 = vsub.f32 %v4989_v8, %v1981_v21  ;;  %v1996_v53 = vsub.f32 %v5005_v47, %v1995_v61  ;;  %v2003_v18 = vsub.f32 %v5025_v28, %v2002_v16  ;;  %v5047_v40 = vsub.f32 %v4911_v45, %v1857_v51 }
 0x37b   :  { %v1975_v20 = vsub.f32 %v4981_v38, %v1974_v2  ;;  %v5017_v1 = vpack.c.bf16 %v1969_v31, %v1962_v34  ;;  %v1989_v6 = vsub.f32 %v4998_v14, %v1988_v32  ;;  %v2010_v58 = vsub.f32 %v5034_v63, %v2009_v44 }
 0x37c   :  { %1780 = vrot.lane.b32.xlu0 %v1748_v56, %s3962_s5  ;;  %v1997_v9 = vand.u32 4294901760, %v1996_v53  ;;  %v2004_v0 = vand.u32 4294901760, %v2003_v18  ;;  %v2016_v25 = vand.u32 4294901760, %v5047_v40  ;;  %v2023_v19 = vand.u32 4294901760, %v5052_v11 }
 0x37d   :  { %1766 = vrot.lane.b32.xlu1 %v1731_v42, %s3961_s18  ;;  %v1976_v24 = vand.u32 4294901760, %v1975_v20  ;;  %v1983_v42 = vand.u32 4294901760, %v1982_v57  ;;  %v1990_v3 = vand.u32 4294901760, %v1989_v6  ;;  %v2011_v30 = vand.u32 4294901760, %v2010_v58 }
 0x37e   :  { %v2017_v45 = vsub.f32 %v5047_v40, %v2016_v25  ;;  %v2024_v12 = vsub.f32 %v5052_v11, %v2023_v19  ;;  %v5081_v34 = vpack.c.bf16 %v4989_v8, %v4981_v38  ;;  %v5085_v48 = vpack.c.bf16 %v5005_v47, %v4998_v14 }
 0x37f   :  { %v5038_v22 = vpack.c.bf16 %v1983_v42, %v1976_v24  ;;  %v5054_v26 = vpack.c.bf16 %v1997_v9, %v1990_v3  ;;  %v5067_v51 = vpack.c.bf16 %v2011_v30, %v2004_v0  ;;  %v5089_v31 = vpack.c.bf16 %v5034_v63, %v5025_v28 }
 0x380   :  { %v2018_v55 = vand.u32 4294901760, %v2017_v45  ;;  %v2025_v56 = vand.u32 4294901760, %v2024_v12  ;;  %v5093_v20 = vpack.c.bf16 %v5052_v11, %v5047_v40  ;;  %v1740_v24 = vmul.f32 %v4129_v46, %v4951_v43 }
 0x381   :  { %1782 = vrot.lane.b32.xlu1 %v1755_v33, %s3962_s5  ;;  %v1742_v46 = vmul.f32 %v4207_v7, %v4967_v39  ;;  %v3819_v37 = vpack.c.bf16 %v1981_v21, %v1974_v2  ;;  %v3823_v23 = vpack.c.bf16 %v1995_v61, %v1988_v32  ;;  %s3964_s5 = smov [#allocation2]  }
 0x382   :  { %v5069_v54 = vpack.c.bf16 %v2025_v56, %v2018_v55  ;;  %s2557_s19 = sshll.u32 %s3964_s5, 4  ;;  %s2558_s19 = int_to_ptr.vmem [resolvable:$true] %s2557_s19 }
 0x383   :  { %p3942_p1 = scmp.lt.s32.totalorder %s2558_s19, %s2558_s19 }
 0x3e1   :  { %v1763_v42 = vpop.permute.xlu1 %1762 }
 0x3e2   :  { %v1761_v57 = vpop.permute.xlu0 %1760  ;;  %v1789_v58 = vsel %vm154_vm6, %v4929_v10, %v1763_v42 }
 0x3e3   :  { %v1788_v6 = vsel %vm154_vm6, %v1740_v24, %v1761_v57 }
 0x3e6   :  { %v1777_v33 = vpop.permute.xlu0 %1776 }
 0x3e7   :  { %v1792_v53 = vsel %vm159_vm7, %v1788_v6, %v1777_v33 }
 0x3e8   :  { %v1815_v3 = vsel %vm181_vm8, %v1792_v53, 0 }
 0x3e9   :  { %v5100_v9 = vand.u32 4294901760, %v1815_v3 }
 0x3ea   :  { %v1765_v18 = vpop.permute.xlu0 %1764 }
 0x3eb   :  { %v5105_v0 = vsub.f32 %v1815_v3, %v5100_v9  ;;  %v1779_v30 = vpop.permute.xlu1 %1778  ;;  %v1790_v55 = vsel %vm154_vm6, %v1742_v46, %v1765_v18 }
 0x3ec   :  { %v1793_v43 = vsel %vm159_vm7, %v1789_v58, %v1779_v30 }
 0x3ed   :  { %v1818_v45 = vsel %vm181_vm8, %v1793_v43, 0  ;;  %v1905_v12 = vand.u32 4294901760, %v5105_v0 }
 0x3ee   :  { %v5113_v56 = vand.u32 4294901760, %v1818_v45  ;;  %v1781_v57 = vpop.permute.xlu0 %1780 }
 0x3ef   :  { %v1794_v10 = vsel %vm159_vm7, %v1790_v55, %v1781_v57  ;;  %v1767_v24 = vpop.permute.xlu1 %1766  ;;  %v1906_v6 = vsub.f32 %v5105_v0, %v1905_v12 }
 0x3f0   :  { %v5120_v7 = vsub.f32 %v1818_v45, %v5113_v56  ;;  %v1821_v39 = vsel %vm181_vm8, %v1794_v10, 0  ;;  %v1791_v18 = vsel %vm154_vm6, %v4971_v17, %v1767_v24 }
 0x3f1   :  { %v5123_v33 = vand.u32 4294901760, %v1821_v39  ;;  %v1907_v42 = vand.u32 4294901760, %v1906_v6 }
 0x3f2   :  { %v1915_v53 = vand.u32 4294901760, %v5120_v7 }
 0x3f3   :  { %v5127_v3 = vsub.f32 %v1821_v39, %v5123_v33  ;;  %v1783_v58 = vpop.permute.xlu1 %1782  ;;  %3271 = vmatprep.mubr.f32.mxu0 %v1907_v42 }
 0x3f4   :  { %v1916_v30 = vsub.f32 %v5120_v7, %v1915_v53  ;;  %v1795_v46 = vsel %vm159_vm7, %v1791_v18, %v1783_v58 }
 0x3f5   :  { %v1824_v43 = vsel %vm181_vm8, %v1795_v46, 0  ;;  %v1925_v45 = vand.u32 4294901760, %v5127_v3 }
 0x3f6   :  { %v1917_v55 = vand.u32 4294901760, %v1916_v30  ;;  %v5137_v57 = vand.u32 4294901760, %v1824_v43 }
 0x3f7   :  { %v1926_v10 = vsub.f32 %v5127_v3, %v1925_v45 }
 0x3f8   :  { %v1934_v6 = vsub.f32 %v1824_v43, %v5137_v57  ;;  %3272 = vmatmul.mubr.f32.vlgmr.msra.gmra.mrb[4].mxu0 %v1917_v55 }
 0x3f9   :  { %3742 = vmatpush3.bf16.msra.mxu0 %v4984_v5  ;;  %v1927_v17 = vand.u32 4294901760, %v1926_v10  ;;  %v3811_v5 = vpack.c.bf16 %v1953_v36, %v1946_v50  ;;  %v3827_v50 = vpack.c.bf16 %v2009_v44, %v2002_v16  ;;  %v3831_v36 = vpack.c.bf16 %v2023_v19, %v2016_v25 }
 0x3fa   :  { %3744 = vmatprep.subr.bf16.mxu0 %v5017_v1  ;;  %v1935_v24 = vand.u32 4294901760, %v1934_v6 }
 0x3fb   :  { %3274 = vmatprep.mubr.f32.mxu0 %v1927_v17 }
 0x3fc   :  { %v1936_v39 = vsub.f32 %v1934_v6, %v1935_v24 }
 0x3fd   :  { %3746 = vmatpush3.bf16.msra.mxu0 %v5017_v1  ;;  %v3815_v1 = vpack.c.bf16 %v1967_v27, %v1960_v35 }
 0x3fe   :  { %3748 = vmatprep.subr.bf16.mxu0 %v5038_v22  ;;  %v1937_v42 = vand.u32 4294901760, %v1936_v39 }
 0x400   :  { %3275 = vmatmul.mubr.f32.gmra.mrb[6].mxu0 %v1937_v42 }
 0x401   :  { %3750 = vmatpush3.bf16.msra.mxu0 %v5038_v22  ;;  %3301 = vmatprep.mubr.f32.mxu0 %v5100_v9 }
 0x402   :  { %3752 = vmatprep.subr.bf16.mxu0 %v5054_v26 }
 0x405   :  { %3754 = vmatpush3.bf16.msra.mxu0 %v5054_v26 }
 0x406   :  { %3756 = vmatprep.subr.bf16.mxu0 %v5067_v51 }
 0x409   :  { %3758 = vmatpush3.bf16.msra.mxu0 %v5067_v51 }
 0x40a   :  { %3760 = vmatprep.subr.bf16.mxu0 %v5069_v54 }
 0x40d   :  { %3762 = vmatpush3.bf16.msra.mxu0 %v5069_v54 }
 0x40e   :  { %3764 = vmatprep.subr.bf16.mxu0 %v5073_v52 }
 0x410   :  { %3302 = vmatmul.mubr.f32.vlgmr.msra.gmra.mrb[4].mxu0 %v5113_v56 }
 0x411   :  { %3304 = vmatprep.mubr.f32.mxu0 %v5123_v33  ;;  %3766 = vmatpush3.bf16.msra.mxu0 %v5073_v52 }
 0x412   :  { %3768 = vmatprep.subr.bf16.mxu0 %v5077_v13 }
 0x414   :  { %3305 = vmatmul.mubr.f32.gmra.mrb[6].mxu0 %v5137_v57 }
 0x415   :  { %3770 = vmatpush3.bf16.msra.mxu0 %v5077_v13  ;;  %3331 = vmatprep.mubr.f32.mxu0 %v5105_v0 }
 0x416   :  { %3772 = vmatprep.subr.bf16.mxu0 %v5081_v34 }
 0x419   :  { %3774 = vmatpush3.bf16.msra.mxu0 %v5081_v34 }
 0x41a   :  { %3776 = vmatprep.subr.bf16.mxu0 %v5085_v48 }
 0x41d   :  { %3778 = vmatpush3.bf16.msra.mxu0 %v5085_v48 }
 0x41e   :  { %3780 = vmatprep.subr.bf16.mxu0 %v5089_v31 }
 0x421   :  { %3782 = vmatpush3.bf16.msra.mxu0 %v5089_v31 }
 0x422   :  { %3784 = vmatprep.subr.bf16.mxu0 %v5093_v20 }
 0x425   :  { %3786 = vmatpush3.bf16.msra.mxu0 %v5093_v20 }
 0x426   :  { %3788 = vmatprep.subr.bf16.mxu0 %v4823_v60 }
 0x428   :  { %3332 = vmatmul.mubr.f32.vlgmr.msra.gmra.mrb[4].mxu0 %v5120_v7 }
 0x429   :  { %3334 = vmatprep.mubr.f32.mxu0 %v5127_v3  ;;  %3790 = vmatpush3.bf16.msra.mxu0 %v4823_v60 }
 0x42a   :  { %3792 = vmatprep.subr.bf16.mxu0 %v4838_v41 }
 0x42c   :  { %3335 = vmatmul.mubr.f32.gmra.mrb[6].mxu0 %v1934_v6 }
 0x42d   :  { %3794 = vmatpush3.bf16.msra.mxu0 %v4838_v41  ;;  %3361 = vmatprep.mubr.f32.mxu0 %v1905_v12 }
 0x42e   :  { %3796 = vmatprep.subr.bf16.mxu0 %v4858_v4 }
 0x431   :  { %3798 = vmatpush3.bf16.msra.mxu0 %v4858_v4 }
 0x432   :  { %3800 = vmatprep.subr.bf16.mxu0 %v4881_v49 }
 0x435   :  { %3802 = vmatpush3.bf16.msra.mxu0 %v4881_v49 }
 0x436   :  { %3804 = vmatprep.subr.bf16.mxu0 %v4901_v62 }
 0x439   :  { %3806 = vmatpush3.bf16.msra.mxu0 %v4901_v62 }
 0x43a   :  { %3808 = vmatprep.subr.bf16.mxu0 %v4937_v29 }
 0x43d   :  { %3810 = vmatpush3.bf16.msra.mxu0 %v4937_v29 }
 0x43e   :  { %3812 = vmatprep.subr.bf16.mxu0 %v3811_v5 }
 0x440   :  { %3362 = vmatmul.mubr.f32.vlgmr.msra.gmra.mrb[4].mxu0 %v1915_v53 }
 0x441   :  { %3364 = vmatprep.mubr.f32.mxu0 %v1925_v45  ;;  %3814 = vmatpush3.bf16.msra.mxu0 %v3811_v5 }
 0x442   :  { %3816 = vmatprep.subr.bf16.mxu0 %v3815_v1 }
 0x444   :  { %3365 = vmatmul.mubr.f32.gmra.mrb[6].mxu0 %v1935_v24 }
 0x445   :  { %3818 = vmatpush3.bf16.msra.mxu0 %v3815_v1  ;;  %3391 = vmatprep.mubr.f32.mxu0 %v5100_v9 }
 0x446   :  { %3820 = vmatprep.subr.bf16.mxu0 %v3819_v37 }
 0x449   :  { %3822 = vmatpush3.bf16.msra.mxu0 %v3819_v37 }
 0x44a   :  { %3824 = vmatprep.subr.bf16.mxu0 %v3823_v23 }
 0x44d   :  { %3826 = vmatpush3.bf16.msra.mxu0 %v3823_v23 }
 0x44e   :  { %3828 = vmatprep.subr.bf16.mxu0 %v3827_v50 }
 0x451   :  { %3830 = vmatpush3.bf16.msra.mxu0 %v3827_v50 }
 0x452   :  { %3832 = vmatprep.subr.bf16.mxu0 %v3831_v36 }
 0x455   :  { %3834 = vmatpush3.bf16.msra.mxu0 %v3831_v36 }
 0x456   :  { %3836 = vmatprep.subr.bf16.mxu0 %v4823_v60 }
 0x458   :  { %3392 = vmatmul.mubr.f32.vlgmr.msra.gmra.mrb[4].mxu0 %v5113_v56 }
 0x459   :  { %3394 = vmatprep.mubr.f32.mxu0 %v5123_v33  ;;  %3838 = vmatpush3.bf16.msra.mxu0 %v4823_v60  ;;  %v2598_v60 = vld [vmem:[%s5252_s2 + $0x2] ss:$0 sm:$0xff]  ;;  %s3937_s2 = scalar_lea.vmem %s2558_s19, 512 }
 0x45a   :  { %3840 = vmatprep.subr.bf16.mxu0 %v4838_v41  ;;  %p3938_p0 = scmp.ne.s32.totalorder %s2558_s19, %s3937_s2  ;;  %p3943_p2 = scmp.lt.s32.totalorder %s3937_s2, %s3937_s2 }
 0x45c   :  { %3395 = vmatmul.mubr.f32.gmra.mrb[6].mxu0 %v5137_v57  ;;  %p3944_p3 = por %p3943_p2, %p3942_p1 }
 0x45d   :  { %3842 = vmatpush3.bf16.msra.mxu0 %v4838_v41  ;;  %3421 = vmatprep.mubr.f32.mxu0 %v5100_v9 }
 0x45e   :  { %3844 = vmatprep.subr.bf16.mxu0 %v4858_v4  ;;  %p3945_p4 = pnand %p3944_p3, %p3938_p0 }
 0x461   :  { %3846 = vmatpush3.bf16.msra.mxu0 %v4858_v4 }
 0x462   :  { %3848 = vmatprep.subr.bf16.mxu0 %v4881_v49 }
 0x465   :  { %3850 = vmatpush3.bf16.msra.mxu0 %v4881_v49 }
 0x466   :  { %3852 = vmatprep.subr.bf16.mxu0 %v4901_v62 }
 0x469   :  { %3854 = vmatpush3.bf16.msra.mxu0 %v4901_v62 }
 0x46a   :  { %3856 = vmatprep.subr.bf16.mxu0 %v4937_v29 }
 0x46d   :  { %3858 = vmatpush3.bf16.msra.mxu0 %v4937_v29 }
 0x470   :  { %3422 = vmatmul.mubr.f32.vlgmr.msra.gmra.mrb[4].mxu0 %v5113_v56 }
 0x471   :  { %3424 = vmatprep.mubr.f32.mxu0 %v5123_v33 }
 0x474   :  { %3425 = vmatmul.mubr.f32.gmra.mrb[6].mxu0 %v5137_v57 }
 0x543   :  { %v3423_v41 = vpop.f32.mrb[4].mxu0 }
 0x544   :  { %v3871_v4 = vadd.f32 %v3423_v41, %v2598_v60  ;;  %v2522_v49 = vpop.f32.mrb[5].mxu0 }
 0x545   :  { %v3872_v15 = vadd.f32 %v2598_v60, %v2522_v49 }
 0x546   :  { %v2545_v35 = vmax.f32 %v3871_v4, 0.0 }
 0x547   :  { %v2544_v62 = vmax.f32 %v3872_v15, 0.0  ;;  %v3426_v59 = vpop.f32.mrb[6].mxu0 }
 0x548   :  { %2549 = vst.msk [vmem:[#allocation2 + $0x8] sm:$0xff] %vm154_vm6, %v2545_v35  ;;  %v3873_v29 = vadd.f32 %v3426_v59, %v2598_v60  ;;  %v2534_v27 = vpop.f32.mrb[7].mxu0 }
 0x549   :  { %2548 = vst.msk [vmem:[#allocation2] sm:$0xff] %vm154_vm6, %v2544_v62  ;;  %v3874_v38 = vadd.f32 %v2598_v60, %v2534_v27 }
 0x54a   :  { %v2547_v8 = vmax.f32 %v3873_v29, 0.0 }
 0x54b   :  { %v2546_v2 = vmax.f32 %v3874_v38, 0.0 }
 0x54c   :  { %2551 = vst.msk [vmem:[#allocation2 + $0x18] sm:$0xff] %vm154_vm6, %v2547_v8 }
 0x54d   :  { %2550 = vst.msk [vmem:[#allocation2 + $0x10] sm:$0xff] %vm154_vm6, %v2546_v2 }
 0x54e   :  { %3948 = shalt.err (!%p3945_p4)
}
 0x54f   :  { %s3949_s22 = scalar_lea.hbm %s5253_s3, 512 }
 0x550   :  { %p3950_p5 = scmp.ne.s32.totalorder %s5253_s3, %s3949_s22  ;;  %p3953_p6 = scmp.lt.u32.totalorder %s3949_s22, %s5253_s3 }
 0x552   :  { %p3955_p7 = pnand %p3953_p6, %p3950_p5 }
 0x554   :  { %3958 = shalt.err (!%p3955_p7)
}
 0x555   :  { %s3965_s0 = smov 128   ;;  %s3966_s27 = smov 8  }
 0x556   :  { %2563 = dma.vmem_to_hbm [thread:$0]  %s2558_s19, 512, %s5253_s3, [#allocation3], %s3965_s0, %s3965_s0, %s3966_s27  }
 0x557   :  { %3959 = dma.done.wait [#allocation3], 512  }
 0x558   :  { %3960 = vsyncadd [#allocation3], 4294966784 }
 0x559   :  { %2567 = vsyncpa [#allocation3], 1 }

</bundles_post_ra>
